<compile_context>
chip_gen: v7x
topology: tpu7x:2x2x1
jax: 0.10.0
libtpu: 0.0.40
codegen_flags: <defaults>
</compile_context>

<pallas_src>
import functools

import jax
import jax.numpy as jnp
from jax.experimental import pallas as pl
from jax.experimental.pallas import tpu as pltpu


def _round_up(n, m):
    return ((n + m - 1) // m) * m


def _vmem_capacity_bytes():
    try:
        return int(pltpu.get_tpu_info().vmem_capacity_bytes)
    except Exception:
        return 64 << 20  # conservative fallback (v7x per-TC VMEM)


def _layer_norm_kernel(gamma_ref, beta_ref, x_ref, o_ref, *, epsilon):
    # x_ref / o_ref: (row_tile, H) VMEM tiles (H is the true last dim, no lane padding);
    # gamma_ref / beta_ref: (1,) SMEM scalars.
    h = x_ref.shape[-1]
    x = x_ref[...].astype(jnp.float32)

    # Two-pass stats on the VMEM-resident tile: mean, then centered sum of squares.
    # Robust against cancellation; no extra HBM traffic. Mosaic masks the layout-pad
    # lanes, so reductions see only the h valid columns.
    mean = jnp.mean(x, axis=-1, keepdims=True)
    centered = x - mean
    # Unbiased variance (Bessel's correction) to match torch.std default.
    # h == 1 divides by zero -> inf/nan, matching torch semantics (intentional).
    var = jnp.sum(centered * centered, axis=-1, keepdims=True) / float(h - 1)
    std = jnp.sqrt(var)

    gamma = gamma_ref[0]
    beta = beta_ref[0]
    # Per-row (row_tile, 1) column work; the full-tile path is a single mul + add.
    scale = gamma * pl.reciprocal(std + epsilon, approx=False)
    shift = beta - mean * scale
    o_ref[...] = (x * scale + shift).astype(o_ref.dtype)


def layer_normalization(x, gamma, beta, *, epsilon=1e-6, row_tile=None):
    """Apply LayerNormalization along the last axis of x (matches the PyTorch module)."""
    orig_shape = x.shape
    h = orig_shape[-1]
    x2 = x.reshape(-1, h)
    rows = x2.shape[0]

    itemsize = jnp.dtype(x.dtype).itemsize
    sub = max(8, 32 // itemsize)  # sublane packing: 8 (f32), 16 (bf16), 32 (int8)

    vmem_cap = _vmem_capacity_bytes()

    if row_tile is None:
        # ~1/3 of physical VMEM for the live tile set (~21 MiB on v7x, ~42 MiB on v5e/v6e).
        tile_budget = vmem_cap // 3
        # Per row: double-buffered input + output tiles (native dtype) plus ~3 full-tile
        # f32 temps inside the kernel (x upcast, centered, product).
        bytes_per_row = h * (4 * itemsize + 3 * 4)
        row_tile = max(tile_budget // max(bytes_per_row, 1), sub)
        # Keep >= ~4 grid steps so the "parallel" row axis can shard across both
        # TensorCores on v7x (no effect on single-TC v5e/v6e).
        row_tile = min(row_tile, _round_up(pl.cdiv(rows, 4), sub))
    row_tile = int(row_tile)

    if rows <= sub:
        # Block equals the full row extent (allowed even when not a multiple of 8).
        row_tile = rows
    else:
        row_tile = max((min(row_tile, rows) // sub) * sub, sub)
        # Never exceed the largest sublane-aligned block that fits inside the array;
        # the remainder rows become a masked partial last block (no host-side padding).
        row_tile = min(row_tile, (rows // sub) * sub)

    grid = (pl.cdiv(rows, row_tile),)

    # vmem_limit tracks the actual tile choice (double-buffered in/out + f32 temps)
    # plus headroom, clamped safely under the physical per-core capacity.
    tile_elems = row_tile * h
    vmem_limit = int(tile_elems * (4 * itemsize + 3 * 4)) + (4 << 20)
    vmem_limit = max(vmem_limit, 16 << 20)
    vmem_limit = min(vmem_limit, vmem_cap - (8 << 20))

    out = pl.pallas_call(
        functools.partial(_layer_norm_kernel, epsilon=epsilon),
        out_shape=jax.ShapeDtypeStruct((rows, h), x.dtype),
        grid=grid,
        in_specs=[
            pl.BlockSpec(memory_space=pltpu.MemorySpace.SMEM),   # gamma (1,)
            pl.BlockSpec(memory_space=pltpu.MemorySpace.SMEM),   # beta  (1,)
            pl.BlockSpec((row_tile, h), lambda i: (i, 0)),       # x tile
        ],
        out_specs=pl.BlockSpec((row_tile, h), lambda i: (i, 0)),
        compiler_params=pltpu.CompilerParams(
            dimension_semantics=("parallel",),   # shards rows across TCs on v7x
            vmem_limit_bytes=vmem_limit,
        ),
    )(gamma, beta, x2)

    return out.reshape(orig_shape)


def _reference(x, gamma, beta, epsilon):
    mean = jnp.mean(x, axis=-1, keepdims=True)
    std = jnp.std(x, axis=-1, keepdims=True, ddof=1)
    return gamma[0] * (x - mean) / (std + epsilon) + beta[0]


if __name__ == "__main__":
    key = jax.random.PRNGKey(0)

    # Deterministic parameters (matches nn.Parameter(torch.ones(1)/zeros(1))).
    gamma = jnp.ones((1,), dtype=jnp.float32)
    beta = jnp.zeros((1,), dtype=jnp.float32)

    k1, k2, k3 = jax.random.split(key, 3)

    # Case 1: transformer-style input with small, non-128-multiple hidden
    # (exercises Mosaic's masked lanes on the last dim, no host padding).
    x1 = jax.random.normal(k1, (2, 8, 32), dtype=jnp.float32)
    out1 = jax.block_until_ready(layer_normalization(x1, gamma, beta, epsilon=1e-6))
    ref1 = _reference(x1, gamma, beta, 1e-6)
    assert out1.shape == x1.shape and out1.dtype == x1.dtype
    assert jnp.allclose(out1, ref1, atol=1e-5, rtol=1e-5), "mismatch vs reference (case 1)"

    # Case 2: lane-dense hidden with a row count that is NOT a multiple of the row tile
    # (exercises the masked partial last grid block, no host padding or slicing).
    x2 = jax.random.normal(k2, (3, 5, 256), dtype=jnp.float32)
    out2 = jax.block_until_ready(layer_normalization(x2, gamma, beta, epsilon=1e-6))
    ref2 = _reference(x2, gamma, beta, 1e-6)
    assert out2.shape == x2.shape and out2.dtype == x2.dtype
    assert jnp.allclose(out2, ref2, atol=1e-5, rtol=1e-5), "mismatch vs reference (case 2)"

    # Case 3: fewer rows than a sublane (block equals the full array extent on both dims).
    x3 = jax.random.normal(k3, (1, 4, 200), dtype=jnp.float32)
    out3 = jax.block_until_ready(layer_normalization(x3, gamma, beta, epsilon=1e-6))
    ref3 = _reference(x3, gamma, beta, 1e-6)
    assert out3.shape == x3.shape and out3.dtype == x3.dtype
    assert jnp.allclose(out3, ref3, atol=1e-5, rtol=1e-5), "mismatch vs reference (case 3)"

    print("KERNEL_OK")
</pallas_src>

<mosaic_0001>
module attributes {stable_mosaic.version = 11 : i64} {
  func.func @_layer_norm_kernel(%arg0: i32, %arg1: memref<1xf32, #tpu.memory_space<smem>>, %arg2: memref<1xf32, #tpu.memory_space<smem>>, %arg3: memref<8x32xf32, #tpu.memory_space<vmem>>, %arg4: memref<8x32xf32, #tpu.memory_space<vmem>>) attributes {dimension_semantics = [#tpu.dimension_semantics<parallel>], iteration_bounds = array<i64: 2>, scalar_prefetch = 0 : i64, scratch_operands = 0 : i64, tpu.core_type = #tpu.core_type<tc>, window_params = [{transform_indices = @transform_0, window_bounds = array<i64: 1>}, {transform_indices = @transform_1, window_bounds = array<i64: 1>}, {transform_indices = @transform_2, window_bounds = array<i64: 8, 32>}, {transform_indices = @transform_3, window_bounds = array<i64: 8, 32>}]} {
    %c0 = arith.constant 0 : index
    %c0_0 = arith.constant 0 : index
    %0 = vector.load %arg3[%c0, %c0_0] : memref<8x32xf32, #tpu.memory_space<vmem>>, vector<8x32xf32>
    %cst = arith.constant dense<0.000000e+00> : vector<8xf32>
    %1 = vector.multi_reduction <add>, %0, %cst [1] : vector<8x32xf32> to vector<8xf32>
    %2 = vector.shape_cast %1 : vector<8xf32> to vector<8x1xf32>
    %cst_1 = arith.constant 3.200000e+01 : f32
    %3 = vector.broadcast %cst_1 : f32 to vector<8x1xf32>
    %4 = arith.divf %2, %3 : vector<8x1xf32>
    %5 = vector.broadcast %4 : vector<8x1xf32> to vector<8x32xf32>
    %6 = arith.subf %0, %5 : vector<8x32xf32>
    %7 = arith.mulf %6, %6 : vector<8x32xf32>
    %cst_2 = arith.constant dense<0.000000e+00> : vector<8xf32>
    %8 = vector.multi_reduction <add>, %7, %cst_2 [1] : vector<8x32xf32> to vector<8xf32>
    %9 = vector.shape_cast %8 : vector<8xf32> to vector<8x1xf32>
    %cst_3 = arith.constant 3.100000e+01 : f32
    %10 = vector.broadcast %cst_3 : f32 to vector<8x1xf32>
    %11 = arith.divf %9, %10 : vector<8x1xf32>
    %12 = math.sqrt %11 : vector<8x1xf32>
    %c0_4 = arith.constant 0 : index
    %13 = memref.load %arg1[%c0_4] : memref<1xf32, #tpu.memory_space<smem>>
    %c0_5 = arith.constant 0 : index
    %14 = memref.load %arg2[%c0_5] : memref<1xf32, #tpu.memory_space<smem>>
    %cst_6 = arith.constant 9.99999997E-7 : f32
    %15 = vector.broadcast %cst_6 : f32 to vector<8x1xf32>
    %16 = arith.addf %12, %15 : vector<8x1xf32>
    %17 = tpu.reciprocal %16 : vector<8x1xf32> -> vector<8x1xf32>
    %18 = vector.broadcast %13 : f32 to vector<8x1xf32>
    %19 = arith.mulf %18, %17 : vector<8x1xf32>
    %20 = arith.mulf %4, %19 : vector<8x1xf32>
    %21 = vector.broadcast %14 : f32 to vector<8x1xf32>
    %22 = arith.subf %21, %20 : vector<8x1xf32>
    %23 = vector.broadcast %19 : vector<8x1xf32> to vector<8x32xf32>
    %24 = arith.mulf %0, %23 : vector<8x32xf32>
    %25 = vector.broadcast %22 : vector<8x1xf32> to vector<8x32xf32>
    %26 = arith.addf %24, %25 : vector<8x32xf32>
    %c0_7 = arith.constant 0 : index
    %c0_8 = arith.constant 0 : index
    %27 = vector.load %arg4[%c0_7, %c0_8] : memref<8x32xf32, #tpu.memory_space<vmem>>, vector<8x32xf32>
    tpu.vector_store %arg4[%c0_7, %c0_8], %26 {strides = array<i32>} : memref<8x32xf32, #tpu.memory_space<vmem>>, vector<8x32xf32>,
    return
  }
  func.func @transform_0(%arg0: i32) -> i32 {
    %c0_i32 = arith.constant 0 : i32
    %c0_i32_0 = arith.constant 0 : i32
    return %c0_i32 : i32
  }
  func.func @transform_1(%arg0: i32) -> i32 {
    %c0_i32 = arith.constant 0 : i32
    %c0_i32_0 = arith.constant 0 : i32
    return %c0_i32 : i32
  }
  func.func @transform_2(%arg0: i32) -> (i32, i32) {
    %c0_i32 = arith.constant 0 : i32
    %c0_i32_0 = arith.constant 0 : i32
    return %arg0, %c0_i32 : i32, i32
  }
  func.func @transform_3(%arg0: i32) -> (i32, i32) {
    %c0_i32 = arith.constant 0 : i32
    %c0_i32_0 = arith.constant 0 : i32
    return %arg0, %c0_i32 : i32, i32
  }
}

</mosaic_0001>

<bundles_post_ra>
// kernel: tpu_custom_call.1
= control target key start
LH: loop header
LB: loop body
LE: loop exit
PB: predicated region body
PF: predicated region fallthrough
CT: control target
= control target key end

     0   :  { %s661_s0 = inlined_call_operand.<no memory space> [shape: f32[1], index: 0, kind: input, shape index: {}]   ;;  %s662_s1 = inlined_call_operand.<no memory space> [shape: f32[1], index: 1, kind: input, shape index: {}]   ;;  %s663_s2 = inlined_call_operand.hbm [shape: f32[16,32], index: 2, kind: input, shape index: {}]   ;;  %s664_s3 = inlined_call_operand.hbm [shape: f32[16,32], index: 3, kind: output, shape index: {}]  }
   0x1   :  { %8 = sst [smem:[#allocation2]] %s661_s0 }
   0x2   :  { %9 = sst [smem:[#allocation3]] %s662_s1 }
   0x3   :  { %10 = vsyncpa [#allocation5], 0 }
   0x4   :  { %12 = vsyncpa [#allocation5 + $0x1], 0 }
   0x5   :  { %13 = vsyncpa [#allocation6], 0 }
   0x6   :  { %15 = vsyncpa [#allocation6 + $0x1], 0  ;;  %s493_s16 = smov 0   ;;  %s495_s17 = smov 0  }
   0x7   :  { %s497_s18 = smov 0   ;;  %s499_s19 = smov 0  }
   0x8 LB: > { %s514_s0 = sadd.s32 4294967295, %s463_s19   ;;  %s305_s1 = sadd.s32 4294967294, %s463_s19   ;;  %s463_s19 = sphi %s499_s19, %s679_s19   ;;  %s459_s18 = sphi %s497_s18, %s678_s18   ;;  %s455_s17 = sphi %s495_s17, %s677_s17   ;;  %s451_s16 = sphi %s493_s16, %s676_s16  }
   0x9   : > { %s518_s20 = sadd.s32 1, %s463_s19   ;;  %s70_s21 = sadd.s32 1, %s459_s18 }
   0xa   : > { %s67_s22 = ssub.s32 %s463_s19, %s518_s20  ;;  %p77_p0 = scmp.ne.s32.totalorder %s459_s18, %s455_s17 }
   0xb   : > { %p68_p1 = scmp.eq.s32.totalorder %s67_s22, 0  ;;  %p78_p2 = scmp.eq.s32.totalorder %s463_s19, 0 }
   0xc   : > { %p83_p3 = scmp.ne.s32.totalorder %s455_s17, %s451_s16  ;;  %p84_p4 = scmp.eq.s32.totalorder %s514_s0, 0 }
   0xd   : > { %s530_s23 = scalar_select %p68_p1, %s459_s18, %s70_s21  }
   0xe   : > { %p532_p5 = por %p78_p2, %p77_p0  ;;  %p536_p6 = por %p84_p4, %p83_p3 }
   0xf   : > { %p107_p7 = scmp.eq.s32.totalorder %s514_s0, 1  ;;  %p113_p8 = scmp.eq.s32.totalorder %s305_s1, 1 }
  0x10   : > { %p329_p10 = scmp.lt.s32.totalorder %s463_s19, 2  ;;  %s139_s28 = sand.u32 1, %s459_s18  }
  0x11   : > { %p543_p11 = por %p107_p7, %p77_p0  ;;  %p547_p12 = por %p113_p8, %p83_p3 }
  0x12   : > { %s309_s29 = sshll.u32 %s463_s19, 7  ;;  %s308_s30 = sshll.u32 %s139_s28, 3 }
  0x13   : > { %s668_s26 = scalar_select %p543_p11, 1, 0 }
  0x14   : > { %s669_s27 = scalar_select %p547_p12, 1, 0 }
  0x15   : > { %s556_s6 = scalar_lea.hbm %s663_s2, %s309_s29  ;;  %s143_s7 = scalar_lea.vmem [#allocation4], %s308_s30 }
  0x16   : > { %s150_s8 = sshll.u32 %s143_s7, 4  ;;  %p560_p13 = pnand %p329_p10, %p532_p5  ;;  %s564_s8 = int_to_ptr.vmem [resolvable:$true] %s150_s8 }
  0x17   : > { %s140_s10 = scalar_lea.sflag [#allocation5], %s139_s28  ;;  %s367_s11 = scalar_lea.hbm %s556_s6, 128 }
  0x18   : > { %p368_p2 = scmp.ne.s32.totalorder %s556_s6, %s367_s11  ;;  %p369_p3 = pneg %p560_p13 }
  0x19   : > { %s372_s14 = scalar_lea.hbm %s663_s2, 256  ;;  %p373_p5 = scmp.lt.u32.totalorder %s556_s6, %s663_s2 }
  0x1a   : > { %p370_p4 = pnand %p369_p3, %p368_p2  ;;  %p374_p8 = scmp.lt.u32.totalorder %s372_s14, %s367_s11 }
  0x1b   : > { %p376_p9 = scmp.lt.u32.totalorder %s367_s11, %s556_s6 }
  0x1c   : > { %p371_p7 = pneg %p370_p4  ;;  %p375_p10 = por %p374_p8, %p373_p5 }
  0x1e   : > { %p377_p0 = por %p376_p9, %p375_p10 }
  0x20   : > { %p378_p1 = pnand %p377_p0, %p371_p7 }
  0x22   : > { %381 = shalt.err (!%p378_p1)
}
  0x23   : > { %s382_s21 = scalar_lea.vmem %s564_s8, 128  ;;  %s465_s22 = smov [#allocation4]  }
  0x24   : > { %p383_p2 = scmp.ne.s32.totalorder %s564_s8, %s382_s21  ;;  %s387_s24 = sshll.u32 %s465_s22, 4  ;;  %s388_s24 = int_to_ptr.vmem [resolvable:$false] %s387_s24 }
  0x25   : > { %s389_s28 = scalar_lea.vmem %s388_s24, 256  ;;  %p390_p11 = scmp.lt.s32.totalorder %s564_s8, %s388_s24 }
  0x26   : > { %p385_p4 = pnand %p383_p2, %p369_p3  ;;  %p391_p5 = scmp.lt.s32.totalorder %s389_s28, %s382_s21 }
  0x28   : > { %p386_p12 = pneg %p385_p4  ;;  %p392_p8 = por %p391_p5, %p390_p11 }
  0x2a   : > { %p393_p9 = pnand %p392_p8, %p386_p12 }
  0x2c   : > { %396 = shalt.err (!%p393_p9)
}
  0x2d   : > { %324 = dma.hbm_to_vmem [thread:$0]  (!%p560_p13), %s556_s6, 128, %s564_s8, %s140_s10  }
  0x2e   : > { %p671_p0 = scmp.lt.s32.totalorder %s463_s19, 3  ;;  %p672_p1 = scmp.ge.s32.totalorder %s463_s19, 1 }
  0x30   : > { %p156_p3 = pnand %p672_p1, %p671_p0 }
  0x31   : > { %s598_s29 = sand.u32 (!%p156_p3), 1, %s455_s17  }
  0x32   : > { %159 = sbr.rel (%p156_p3) target bundleno = 403 (0x193), region = 32  ;;  %s311_s30 = sshll.u32 (!%p156_p3), %s598_s29, 3 }
  0x33   : > { %s162_s4 = scalar_lea.sflag (!%p156_p3), [#allocation5], %s598_s29  ;;  %s165_s5 = scalar_lea.vmem (!%p156_p3), [#allocation4], %s311_s30 }
  0x39   : > { %442 = dma.done.wait (%p536_p6), %s162_s4, 128  }
  0x3a   : > { %444 = vsyncadd (%p536_p6), %s162_s4, 4294967168  ;;  %vm189_vm0 = vcmask 261120   ;;  %v188_v0 = vld [vmem:[%s165_s5] sm:$0xff]  ;;  %s209_s25 = sld [smem:[#allocation2]]  ;;  %s314_s7 = sshll.u32 %s514_s0, 7 }
  0x3b   : > { %v190_v1 = vsel %vm189_vm0, %v188_v0, 0.0  ;;  %s210_s6 = sld [smem:[#allocation3]]  ;;  %s187_s8 = scalar_lea.vmem [#allocation7], %s311_s30 }
  0x3c   : > { %191 = vadd.xlane.f32.xlu0 %v190_v1  ;;  %s235_s9 = sshll.u32 %s187_s8, 4  ;;  %s616_s12 = scalar_lea.hbm %s664_s3, %s314_s7  ;;  %s618_s9 = int_to_ptr.vmem [resolvable:$true] %s235_s9 }
  0x3d   : > { %s222_s13 = scalar_lea.sflag [#allocation6], %s598_s29  ;;  %s397_s0 = scalar_lea.vmem %s618_s9, 128 }
  0x3e   : > { %p398_p6 = scmp.ne.s32.totalorder %s618_s9, %s397_s0  ;;  %p673_p11 = scmp.ne.s32.totalorder %s668_s26, 0 }
  0x3f   : > { %s466_s14 = smov [#allocation7]  }
  0x40   : > { %v213_v15 = vstv %s209_s25  ;;  %p399_p12 = pnand %p398_p6, %p673_p11  ;;  %s401_s15 = sshll.u32 %s466_s14, 4  ;;  %s402_s15 = int_to_ptr.vmem [resolvable:$false] %s401_s15 }
  0x41   : > { %v216_v18 = vstv %s210_s6  ;;  %s403_s1 = scalar_lea.vmem %s402_s15, 256  ;;  %p404_p7 = scmp.lt.s32.totalorder %s618_s9, %s402_s15 }
  0x42   : > { %p400_p13 = pneg %p399_p12  ;;  %p405_p10 = scmp.lt.s32.totalorder %s403_s1, %s397_s0 }
  0x44   : > { %p406_p2 = por %p405_p10, %p404_p7 }
  0x46   : > { %p407_p4 = pnand %p406_p2, %p400_p13 }
  0xc9   : > { %v192_v2 = vpop.xlane.xlu0 %191 }
  0xca   : > { %v194_v3 = vmul.f32 0.03125, %v192_v2 }
  0xcc   : > { %v195_v4 = vsub.f32 %v188_v0, %v194_v3 }
  0xce   : > { %v196_v5 = vmul.f32 %v195_v4, %v195_v4 }
  0xd0   : > { %v197_v6 = vsel %vm189_vm0, %v196_v5, 0.0 }
  0xd1   : > { %198 = vadd.xlane.f32.xlu0 %v197_v6 }
 0x15e   : > { %v199_v7 = vpop.xlane.xlu0 %198 }
 0x15f   : > { %v201_v8 = vmul.f32 0.032258064, %v199_v7 }
 0x161   : > { %363 = vrsqrt.f32 %v201_v8  ;;  %vm204_vm1 = vcmp.eq.f32.partialorder %v201_v8, inf  ;;  %v207_v11 = vand.u32 2147483648, %v201_v8  ;;  %vm206_vm2 = vcmp.eq.f32.partialorder %v201_v8, 0.0 }
 0x16b   : > { %v364_v9 = vpop.eup %363 }
 0x16c   : > { %v203_v10 = vmul.f32 %v364_v9, %v201_v8 }
 0x16e   : > { %v205_v12 = vsel %vm204_vm1, %v201_v8, %v203_v10 }
 0x16f   : > { %v208_v13 = vsel %vm206_vm2, %v207_v11, %v205_v12 }
 0x170   : > { %v211_v14 = vadd.f32 1e-06, %v208_v13 }
 0x172   : > { %365 = vrcp.f32 %v211_v14 }
 0x17c   : > { %v366_v16 = vpop.eup %365 }
 0x17d   : > { %v214_v17 = vmul.f32 %v366_v16, %v213_v15 }
 0x17f   : > { %v215_v19 = vmul.f32 %v214_v17, %v194_v3  ;;  %v218_v21 = vmul.f32 %v214_v17, %v188_v0 }
 0x181   : > { %v217_v20 = vsub.f32 %v216_v18, %v215_v19 }
 0x183   : > { %v219_v22 = vadd.f32 %v218_v21, %v217_v20 }
 0x185   : > { %220 = vst.msk [vmem:[%s187_s8] sm:$0xff] %vm189_vm0, %v219_v22 }
 0x186   : > { %410 = shalt.err (!%p407_p4)
}
 0x187   : > { %s411_s21 = scalar_lea.hbm %s616_s12, 128  ;;  %s415_s28 = scalar_lea.hbm %s664_s3, 256 }
 0x188   : > { %p412_p5 = scmp.ne.s32.totalorder %s616_s12, %s411_s21  ;;  %p416_p0 = scmp.lt.u32.totalorder %s616_s12, %s664_s3 }
 0x189   : > { %p417_p1 = scmp.lt.u32.totalorder %s415_s28, %s411_s21  ;;  %p419_p6 = scmp.lt.u32.totalorder %s411_s21, %s616_s12 }
 0x18a   : > { %p413_p8 = pnand %p412_p5, %p673_p11 }
 0x18b   : > { %p418_p3 = por %p417_p1, %p416_p0 }
 0x18c   : > { %p414_p9 = pneg %p413_p8 }
 0x18d   : > { %p420_p12 = por %p419_p6, %p418_p3 }
 0x18f   : > { %p421_p13 = pnand %p420_p12, %p414_p9 }
 0x191   : > { %424 = shalt.err (!%p421_p13)
}
 0x192   : > { %319 = dma.vmem_to_hbm [thread:$0]  (%p673_p11), %s618_s9, 128, %s616_s12, %s222_s13  }
 0x193 PF: > { %s247_s4 = sand.u32 1, %s451_s16   ;;  %p674_p7 = scmp.ne.s32.totalorder %s669_s27, 0 }
 0x194   : > { %p675_p10 = scmp.ge.s32.totalorder %s463_s19, 2  ;;  %s248_s5 = scalar_lea.sflag [#allocation6], %s247_s4 }
 0x196   : > { %p326_p2 = pnand %p675_p10, %p674_p7 }
 0x198   : > { %446 = dma.done.wait (!%p326_p2), %s248_s5, 128  }
 0x199   : > { %448 = vsyncadd (!%p326_p2), %s248_s5, 4294967168  ;;  %p18_p4 = scmp.ge.s32.totalorder %s518_s20, 4   ;;  %s676_s16 = smov %s455_s17 }
 0x19a   : > { %s677_s17 = smov %s459_s18  ;;  %s678_s18 = smov %s530_s23 }
 0x19b   : > { %s679_s19 = smov %s518_s20  ;;  %20 = sbr.rel (!%p18_p4) target bundleno = 8 (0x8), region = 77 }
 0x1a2   :  { %253 = vsyncpa [#allocation5], 1 }
 0x1a3   :  { %255 = vsyncpa [#allocation5 + $0x1], 1 }
 0x1a4   :  { %256 = vsyncpa [#allocation6], 1 }
 0x1a5   :  { %258 = vsyncpa [#allocation6 + $0x1], 1 }

</bundles_post_ra>
